<compile_context>
chip_gen: v6e
topology: v6e:2x2x1
jax: 0.10.0
libtpu: 0.0.40
codegen_flags: <defaults>
</compile_context>

<pallas_src>
import functools

import jax
import jax.numpy as jnp
from jax.experimental import pallas as pl
from jax.experimental.pallas import tpu as pltpu


# ----------------------------- helpers (usable in-kernel and in reference) ---

_SQRT_2_OVER_PI = 0.7978845608028654


def _gelu_tanh(x):
    return 0.5 * x * (1.0 + jnp.tanh(_SQRT_2_OVER_PI * (x + 0.044715 * x * x * x)))


def _layer_norm(x, gamma, beta, eps=1e-5):
    mu = jnp.mean(x, axis=-1, keepdims=True)
    var = jnp.mean(jnp.square(x - mu), axis=-1, keepdims=True)
    return (x - mu) * jax.lax.rsqrt(var + eps) * gamma + beta


# ----------------------------------------------------------------- kernel ----

def _vit_block_kernel(x_ref,
                      g1_ref, be1_ref,
                      wq_ref, bq_ref, wk_ref, bk_ref, wv_ref, bv_ref,
                      wo_ref, bo_ref,
                      g2_ref, be2_ref,
                      w1_ref, b1_ref, w2_ref, b2_ref,
                      o_ref, *, n_heads):
    L, E = x_ref.shape[1], x_ref.shape[2]
    D = E // n_heads
    scale = 1.0 / (E ** 0.5)          # PyTorch divides by sqrt(embedding_dim)

    x = x_ref[0].astype(jnp.float32)  # (L, E)

    # ---- LayerNorm 1 ------------------------------------------------------
    h = _layer_norm(x, g1_ref[...], be1_ref[...])

    # ---- per-head Q/K/V projections via block-diagonal weights (one lane-
    #      dense (L,E)@(E,E) MXU matmul each, weights prepared in wrapper) ---
    q = jnp.dot(h, wq_ref[...], preferred_element_type=jnp.float32) + bq_ref[...]
    k = jnp.dot(h, wk_ref[...], preferred_element_type=jnp.float32) + bk_ref[...]
    v = jnp.dot(h, wv_ref[...], preferred_element_type=jnp.float32) + bv_ref[...]

    # ---- multi-head self-attention (heads unrolled at trace time; head
    #      selection via lane masks -> no reshapes / unaligned lane slices) --
    col = jax.lax.broadcasted_iota(jnp.int32, (1, E), 1)
    ctx = jnp.zeros((L, E), jnp.float32)
    for hd in range(n_heads):
        m = jnp.logical_and(col >= hd * D, col < (hd + 1) * D).astype(jnp.float32)
        # energy_h[l, t] = sum_{d in head hd} q[l, d] * k[t, d]
        e_h = jax.lax.dot_general(q * m, k, (((1,), (1,)), ((), ())),
                                  preferred_element_type=jnp.float32) * scale
        e_h = e_h - jnp.max(e_h, axis=-1, keepdims=True)
        p = jnp.exp(e_h)
        p = p / jnp.sum(p, axis=-1, keepdims=True)
        # head-hd context, already placed in its column block of (L, E)
        ctx = ctx + jnp.dot(p, v * m, preferred_element_type=jnp.float32)

    attn = jnp.dot(ctx, wo_ref[...], preferred_element_type=jnp.float32) + bo_ref[...]
    x1 = x + attn

    # ---- LayerNorm 2 + MLP (GELU after BOTH linears, per the spec) ---------
    h2 = _layer_norm(x1, g2_ref[...], be2_ref[...])
    u = _gelu_tanh(jnp.dot(h2, w1_ref[...], preferred_element_type=jnp.float32)
                   + b1_ref[...])
    u = _gelu_tanh(jnp.dot(u, w2_ref[...], preferred_element_type=jnp.float32)
                   + b2_ref[...])

    o_ref[0] = (x1 + u).astype(o_ref.dtype)


# ---------------------------------------------------------------- wrapper ----

def vit_block(x, params, n_heads):
    """x: (B, L, E) float32. Returns (B, L, E) — Block.forward(x)."""
    B, L, E = x.shape
    D = E // n_heads
    Hd = params["w1"].shape[0]
    f32 = jnp.float32

    # nn.Linear(head_dim, head_dim) shared across heads  ->  block-diag (E, E)
    # acting on the right: q = h @ kron(I_nh, Wq^T) + tile(bq, nh)
    eye = jnp.eye(n_heads, dtype=f32)
    wq_bd = jnp.kron(eye, params["wq"].T.astype(f32))
    wk_bd = jnp.kron(eye, params["wk"].T.astype(f32))
    wv_bd = jnp.kron(eye, params["wv"].T.astype(f32))
    bq_t = jnp.tile(params["bq"].astype(f32), n_heads)[None, :]
    bk_t = jnp.tile(params["bk"].astype(f32), n_heads)[None, :]
    bv_t = jnp.tile(params["bv"].astype(f32), n_heads)[None, :]
    wo_t = params["wo"].T.astype(f32)
    bo = params["bo"].astype(f32)[None, :]
    w1_t = params["w1"].T.astype(f32)      # (E, Hd)
    b1 = params["b1"].astype(f32)[None, :]
    w2_t = params["w2"].T.astype(f32)      # (Hd, E)
    b2 = params["b2"].astype(f32)[None, :]
    g1 = params["g1"].astype(f32)[None, :]
    be1 = params["beta1"].astype(f32)[None, :]
    g2 = params["g2"].astype(f32)[None, :]
    be2 = params["beta2"].astype(f32)[None, :]

    operands = (x, g1, be1, wq_bd, bq_t, wk_bd, bk_t, wv_bd, bv_t,
                wo_t, bo, g2, be2, w1_t, b1, w2_t, b2)

    in_specs = [pl.BlockSpec((1, L, E), lambda b: (b, 0, 0))]
    for a in operands[1:]:
        in_specs.append(pl.BlockSpec(a.shape, lambda b: (0, 0)))

    flops = B * (3 * 2 * L * E * E                    # QKV projections
                 + n_heads * (2 * L * L * E + 2 * L * L * E)   # scores + ctx
                 + 2 * L * E * E                      # output projection
                 + 2 * L * E * Hd + 2 * L * Hd * E)   # MLP
    transcendentals = B * (n_heads * L * L + L * Hd + L * E + 4 * L)
    bytes_accessed = 4 * (2 * x.size + sum(int(a.size) for a in operands[1:]))

    out = pl.pallas_call(
        functools.partial(_vit_block_kernel, n_heads=n_heads),
        out_shape=jax.ShapeDtypeStruct((B, L, E), x.dtype),
        grid=(B,),
        in_specs=in_specs,
        out_specs=pl.BlockSpec((1, L, E), lambda b: (b, 0, 0)),
        compiler_params=pltpu.CompilerParams(
            dimension_semantics=("parallel",)),
        cost_estimate=pl.CostEstimate(
            flops=flops, transcendentals=transcendentals,
            bytes_accessed=bytes_accessed),
    )(*operands)
    return out


# -------------------------------------------------------------- reference ----

def _reference_block(x, p, n_heads):
    B, L, E = x.shape
    D = E // n_heads
    prec = jax.lax.Precision.HIGHEST

    def ln(y, g, b):
        mu = jnp.mean(y, -1, keepdims=True)
        var = jnp.mean(jnp.square(y - mu), -1, keepdims=True)
        return (y - mu) * jax.lax.rsqrt(var + 1e-5) * g + b

    h = ln(x, p["g1"], p["beta1"]).reshape(B, L, n_heads, D)
    q = jnp.einsum("blhd,od->blho", h, p["wq"], precision=prec) + p["bq"]
    k = jnp.einsum("blhd,od->blho", h, p["wk"], precision=prec) + p["bk"]
    v = jnp.einsum("blhd,od->blho", h, p["wv"], precision=prec) + p["bv"]
    energy = jnp.einsum("bqhd,bkhd->bhqk", q, k, precision=prec) / (E ** 0.5)
    attn = jax.nn.softmax(energy, axis=-1)
    ctx = jnp.einsum("bhqk,bkhd->bqhd", attn, v, precision=prec).reshape(B, L, E)
    ctx = jnp.einsum("ble,oe->blo", ctx, p["wo"], precision=prec) + p["bo"]
    x1 = x + ctx
    h2 = ln(x1, p["g2"], p["beta2"])
    u = _gelu_tanh(jnp.einsum("ble,he->blh", h2, p["w1"], precision=prec) + p["b1"])
    u = _gelu_tanh(jnp.einsum("blh,oh->blo", u, p["w2"], precision=prec) + p["b2"])
    return x1 + u


# ------------------------------------------------------------------- main ----

if __name__ == "__main__":
    # Block config: embedding_dim=32, n_heads=4 (head_dim=8), hidden_dim=64,
    # batch=2, seq_len=8, qkv_bias=True, dropout prob=0.
    B, L, E, NH, HID = 2, 8, 32, 4, 64
    D = E // NH

    key = jax.random.PRNGKey(0)
    ks = jax.random.split(key, 17)

    def rnd(k, shape, s=0.1):
        return jax.random.normal(k, shape, dtype=jnp.float32) * s

    x = jax.random.normal(ks[0], (B, L, E), dtype=jnp.float32)
    params = dict(
        g1=1.0 + rnd(ks[1], (E,), 0.05), beta1=rnd(ks[2], (E,), 0.05),
        wq=rnd(ks[3], (D, D)), bq=rnd(ks[4], (D,)),
        wk=rnd(ks[5], (D, D)), bk=rnd(ks[6], (D,)),
        wv=rnd(ks[7], (D, D)), bv=rnd(ks[8], (D,)),
        wo=rnd(ks[9], (E, E)), bo=rnd(ks[10], (E,)),
        g2=1.0 + rnd(ks[11], (E,), 0.05), beta2=rnd(ks[12], (E,), 0.05),
        w1=rnd(ks[13], (HID, E)), b1=rnd(ks[14], (HID,)),
        w2=rnd(ks[15], (E, HID)), b2=rnd(ks[16], (E,)),
    )

    out = vit_block(x, params, NH)
    out = jax.block_until_ready(out)

    ref = _reference_block(x, params, NH)
    assert out.shape == (B, L, E)
    err = float(jnp.max(jnp.abs(out - ref)))
    assert jnp.allclose(out, ref, atol=2e-3, rtol=2e-3), f"max abs err {err}"

    print("KERNEL_OK")
</pallas_src>

<mosaic_0001>
module attributes {stable_mosaic.version = 11 : i64} {
  func.func @_vit_block_kernel(%arg0: i32, %arg1: memref<1x8x32xf32, #tpu.memory_space<vmem>>, %arg2: memref<1x32xf32, #tpu.memory_space<vmem>>, %arg3: memref<1x32xf32, #tpu.memory_space<vmem>>, %arg4: memref<32x32xf32, #tpu.memory_space<vmem>>, %arg5: memref<1x32xf32, #tpu.memory_space<vmem>>, %arg6: memref<32x32xf32, #tpu.memory_space<vmem>>, %arg7: memref<1x32xf32, #tpu.memory_space<vmem>>, %arg8: memref<32x32xf32, #tpu.memory_space<vmem>>, %arg9: memref<1x32xf32, #tpu.memory_space<vmem>>, %arg10: memref<32x32xf32, #tpu.memory_space<vmem>>, %arg11: memref<1x32xf32, #tpu.memory_space<vmem>>, %arg12: memref<1x32xf32, #tpu.memory_space<vmem>>, %arg13: memref<1x32xf32, #tpu.memory_space<vmem>>, %arg14: memref<32x64xf32, #tpu.memory_space<vmem>>, %arg15: memref<1x64xf32, #tpu.memory_space<vmem>>, %arg16: memref<64x32xf32, #tpu.memory_space<vmem>>, %arg17: memref<1x32xf32, #tpu.memory_space<vmem>>, %arg18: memref<1x8x32xf32, #tpu.memory_space<vmem>>) attributes {dimension_semantics = [#tpu.dimension_semantics<parallel>], iteration_bounds = array<i64: 2>, scalar_prefetch = 0 : i64, scratch_operands = 0 : i64, tpu.core_type = #tpu.core_type<tc>, window_params = [{transform_indices = @transform_0, window_bounds = array<i64: 1, 8, 32>}, {pipeline_mode = #tpu.pipeline_mode<synchronous>, transform_indices = @transform_1, window_bounds = array<i64: 1, 32>}, {pipeline_mode = #tpu.pipeline_mode<synchronous>, transform_indices = @transform_2, window_bounds = array<i64: 1, 32>}, {pipeline_mode = #tpu.pipeline_mode<synchronous>, transform_indices = @transform_3, window_bounds = array<i64: 32, 32>}, {pipeline_mode = #tpu.pipeline_mode<synchronous>, transform_indices = @transform_4, window_bounds = array<i64: 1, 32>}, {pipeline_mode = #tpu.pipeline_mode<synchronous>, transform_indices = @transform_5, window_bounds = array<i64: 32, 32>}, {pipeline_mode = #tpu.pipeline_mode<synchronous>, transform_indices = @transform_6, window_bounds = array<i64: 1, 32>}, {pipeline_mode = #tpu.pipeline_mode<synchronous>, transform_indices = @transform_7, window_bounds = array<i64: 32, 32>}, {pipeline_mode = #tpu.pipeline_mode<synchronous>, transform_indices = @transform_8, window_bounds = array<i64: 1, 32>}, {pipeline_mode = #tpu.pipeline_mode<synchronous>, transform_indices = @transform_9, window_bounds = array<i64: 32, 32>}, {pipeline_mode = #tpu.pipeline_mode<synchronous>, transform_indices = @transform_10, window_bounds = array<i64: 1, 32>}, {pipeline_mode = #tpu.pipeline_mode<synchronous>, transform_indices = @transform_11, window_bounds = array<i64: 1, 32>}, {pipeline_mode = #tpu.pipeline_mode<synchronous>, transform_indices = @transform_12, window_bounds = array<i64: 1, 32>}, {pipeline_mode = #tpu.pipeline_mode<synchronous>, transform_indices = @transform_13, window_bounds = array<i64: 32, 64>}, {pipeline_mode = #tpu.pipeline_mode<synchronous>, transform_indices = @transform_14, window_bounds = array<i64: 1, 64>}, {pipeline_mode = #tpu.pipeline_mode<synchronous>, transform_indices = @transform_15, window_bounds = array<i64: 64, 32>}, {pipeline_mode = #tpu.pipeline_mode<synchronous>, transform_indices = @transform_16, window_bounds = array<i64: 1, 32>}, {transform_indices = @transform_17, window_bounds = array<i64: 1, 8, 32>}]} {
    %c0 = arith.constant 0 : index
    %c0_0 = arith.constant 0 : index
    %c0_1 = arith.constant 0 : index
    %0 = vector.load %arg1[%c0, %c0_0, %c0_1] : memref<1x8x32xf32, #tpu.memory_space<vmem>>, vector<1x8x32xf32>
    %1 = vector.shape_cast %0 : vector<1x8x32xf32> to vector<8x32xf32>
    %c0_2 = arith.constant 0 : index
    %c0_3 = arith.constant 0 : index
    %2 = vector.load %arg2[%c0_2, %c0_3] : memref<1x32xf32, #tpu.memory_space<vmem>>, vector<1x32xf32>
    %c0_4 = arith.constant 0 : index
    %c0_5 = arith.constant 0 : index
    %3 = vector.load %arg3[%c0_4, %c0_5] : memref<1x32xf32, #tpu.memory_space<vmem>>, vector<1x32xf32>
    %cst = arith.constant dense<0.000000e+00> : vector<8xf32>
    %4 = vector.multi_reduction <add>, %1, %cst [1] : vector<8x32xf32> to vector<8xf32>
    %5 = vector.shape_cast %4 : vector<8xf32> to vector<8x1xf32>
    %cst_6 = arith.constant 3.200000e+01 : f32
    %6 = vector.broadcast %cst_6 : f32 to vector<8x1xf32>
    %7 = arith.divf %5, %6 : vector<8x1xf32>
    %8 = vector.broadcast %7 : vector<8x1xf32> to vector<8x32xf32>
    %9 = arith.subf %1, %8 : vector<8x32xf32>
    %10 = arith.mulf %9, %9 : vector<8x32xf32>
    %cst_7 = arith.constant dense<0.000000e+00> : vector<8xf32>
    %11 = vector.multi_reduction <add>, %10, %cst_7 [1] : vector<8x32xf32> to vector<8xf32>
    %12 = vector.shape_cast %11 : vector<8xf32> to vector<8x1xf32>
    %cst_8 = arith.constant 3.200000e+01 : f32
    %13 = vector.broadcast %cst_8 : f32 to vector<8x1xf32>
    %14 = arith.divf %12, %13 : vector<8x1xf32>
    %15 = vector.broadcast %7 : vector<8x1xf32> to vector<8x32xf32>
    %16 = arith.subf %1, %15 : vector<8x32xf32>
    %cst_9 = arith.constant 9.99999974E-6 : f32
    %17 = vector.broadcast %cst_9 : f32 to vector<8x1xf32>
    %18 = arith.addf %14, %17 : vector<8x1xf32>
    %19 = math.rsqrt %18 : vector<8x1xf32>
    %20 = vector.broadcast %19 : vector<8x1xf32> to vector<8x32xf32>
    %21 = arith.mulf %16, %20 : vector<8x32xf32>
    %22 = vector.broadcast %2 : vector<1x32xf32> to vector<8x32xf32>
    %23 = arith.mulf %21, %22 : vector<8x32xf32>
    %24 = vector.broadcast %3 : vector<1x32xf32> to vector<8x32xf32>
    %25 = arith.addf %23, %24 : vector<8x32xf32>
    %c0_10 = arith.constant 0 : index
    %c0_11 = arith.constant 0 : index
    %26 = vector.load %arg4[%c0_10, %c0_11] : memref<32x32xf32, #tpu.memory_space<vmem>>, vector<32x32xf32>
    %cst_12 = arith.constant dense<0.000000e+00> : vector<8x32xf32>
    %27 = tpu.matmul %25, %26, %cst_12 {dimension_numbers = #tpu.dot_dimension_numbers<[1], [0], [0], [1], [0, 0, 1, 1], [], []>} : vector<8x32xf32>, vector<32x32xf32>, vector<8x32xf32> -> vector<8x32xf32>
    %c0_13 = arith.constant 0 : index
    %c0_14 = arith.constant 0 : index
    %28 = vector.load %arg5[%c0_13, %c0_14] : memref<1x32xf32, #tpu.memory_space<vmem>>, vector<1x32xf32>
    %29 = vector.broadcast %28 : vector<1x32xf32> to vector<8x32xf32>
    %30 = arith.addf %27, %29 : vector<8x32xf32>
    %c0_15 = arith.constant 0 : index
    %c0_16 = arith.constant 0 : index
    %31 = vector.load %arg6[%c0_15, %c0_16] : memref<32x32xf32, #tpu.memory_space<vmem>>, vector<32x32xf32>
    %cst_17 = arith.constant dense<0.000000e+00> : vector<8x32xf32>
    %32 = tpu.matmul %25, %31, %cst_17 {dimension_numbers = #tpu.dot_dimension_numbers<[1], [0], [0], [1], [0, 0, 1, 1], [], []>} : vector<8x32xf32>, vector<32x32xf32>, vector<8x32xf32> -> vector<8x32xf32>
    %c0_18 = arith.constant 0 : index
    %c0_19 = arith.constant 0 : index
    %33 = vector.load %arg7[%c0_18, %c0_19] : memref<1x32xf32, #tpu.memory_space<vmem>>, vector<1x32xf32>
    %34 = vector.broadcast %33 : vector<1x32xf32> to vector<8x32xf32>
    %35 = arith.addf %32, %34 : vector<8x32xf32>
    %c0_20 = arith.constant 0 : index
    %c0_21 = arith.constant 0 : index
    %36 = vector.load %arg8[%c0_20, %c0_21] : memref<32x32xf32, #tpu.memory_space<vmem>>, vector<32x32xf32>
    %cst_22 = arith.constant dense<0.000000e+00> : vector<8x32xf32>
    %37 = tpu.matmul %25, %36, %cst_22 {dimension_numbers = #tpu.dot_dimension_numbers<[1], [0], [0], [1], [0, 0, 1, 1], [], []>} : vector<8x32xf32>, vector<32x32xf32>, vector<8x32xf32> -> vector<8x32xf32>
    %c0_23 = arith.constant 0 : index
    %c0_24 = arith.constant 0 : index
    %38 = vector.load %arg9[%c0_23, %c0_24] : memref<1x32xf32, #tpu.memory_space<vmem>>, vector<1x32xf32>
    %39 = vector.broadcast %38 : vector<1x32xf32> to vector<8x32xf32>
    %40 = arith.addf %37, %39 : vector<8x32xf32>
    %41 = tpu.iota {dimensions = array<i32: 1>} : vector<1x32xi32>
    %cst_25 = arith.constant 0.000000e+00 : f32
    %42 = vector.broadcast %cst_25 : f32 to vector<8x32xf32>
    %c0_i32 = arith.constant 0 : i32
    %43 = vector.broadcast %c0_i32 : i32 to vector<1x32xi32>
    %44 = arith.cmpi sge, %41, %43 : vector<1x32xi32>
    %c8_i32 = arith.constant 8 : i32
    %45 = vector.broadcast %c8_i32 : i32 to vector<1x32xi32>
    %46 = arith.cmpi slt, %41, %45 : vector<1x32xi32>
    %47 = arith.andi %44, %46 : vector<1x32xi1>
    %48 = arith.extui %47 : vector<1x32xi1> to vector<1x32xi32>
    %49 = arith.sitofp %48 : vector<1x32xi32> to vector<1x32xf32>
    %50 = vector.broadcast %49 : vector<1x32xf32> to vector<8x32xf32>
    %51 = arith.mulf %30, %50 : vector<8x32xf32>
    %cst_26 = arith.constant dense<0.000000e+00> : vector<8x8xf32>
    %52 = tpu.matmul %51, %35, %cst_26 {dimension_numbers = #tpu.dot_dimension_numbers<[1], [1], [0], [0], [0, 0, 1, 0], [], []>} : vector<8x32xf32>, vector<8x32xf32>, vector<8x8xf32> -> vector<8x8xf32>
    %cst_27 = arith.constant 0.176776692 : f32
    %53 = vector.broadcast %cst_27 : f32 to vector<8x8xf32>
    %54 = arith.mulf %52, %53 : vector<8x8xf32>
    %cst_28 = arith.constant dense<0xFF800000> : vector<8xf32>
    %55 = vector.multi_reduction <maximumf>, %54, %cst_28 [1] : vector<8x8xf32> to vector<8xf32>
    %56 = vector.shape_cast %55 : vector<8xf32> to vector<8x1xf32>
    %57 = vector.broadcast %56 : vector<8x1xf32> to vector<8x8xf32>
    %58 = arith.subf %54, %57 : vector<8x8xf32>
    %59 = math.exp %58 : vector<8x8xf32>
    %cst_29 = arith.constant dense<0.000000e+00> : vector<8xf32>
    %60 = vector.multi_reduction <add>, %59, %cst_29 [1] : vector<8x8xf32> to vector<8xf32>
    %61 = vector.shape_cast %60 : vector<8xf32> to vector<8x1xf32>
    %62 = vector.broadcast %61 : vector<8x1xf32> to vector<8x8xf32>
    %63 = arith.divf %59, %62 : vector<8x8xf32>
    %64 = vector.broadcast %49 : vector<1x32xf32> to vector<8x32xf32>
    %65 = arith.mulf %40, %64 : vector<8x32xf32>
    %cst_30 = arith.constant dense<0.000000e+00> : vector<8x32xf32>
    %66 = tpu.matmul %63, %65, %cst_30 {dimension_numbers = #tpu.dot_dimension_numbers<[1], [0], [0], [1], [0, 0, 1, 1], [], []>} : vector<8x8xf32>, vector<8x32xf32>, vector<8x32xf32> -> vector<8x32xf32>
    %67 = arith.addf %42, %66 : vector<8x32xf32>
    %c8_i32_31 = arith.constant 8 : i32
    %68 = vector.broadcast %c8_i32_31 : i32 to vector<1x32xi32>
    %69 = arith.cmpi sge, %41, %68 : vector<1x32xi32>
    %c16_i32 = arith.constant 16 : i32
    %70 = vector.broadcast %c16_i32 : i32 to vector<1x32xi32>
    %71 = arith.cmpi slt, %41, %70 : vector<1x32xi32>
    %72 = arith.andi %69, %71 : vector<1x32xi1>
    %73 = arith.extui %72 : vector<1x32xi1> to vector<1x32xi32>
    %74 = arith.sitofp %73 : vector<1x32xi32> to vector<1x32xf32>
    %75 = vector.broadcast %74 : vector<1x32xf32> to vector<8x32xf32>
    %76 = arith.mulf %30, %75 : vector<8x32xf32>
    %cst_32 = arith.constant dense<0.000000e+00> : vector<8x8xf32>
    %77 = tpu.matmul %76, %35, %cst_32 {dimension_numbers = #tpu.dot_dimension_numbers<[1], [1], [0], [0], [0, 0, 1, 0], [], []>} : vector<8x32xf32>, vector<8x32xf32>, vector<8x8xf32> -> vector<8x8xf32>
    %cst_33 = arith.constant 0.176776692 : f32
    %78 = vector.broadcast %cst_33 : f32 to vector<8x8xf32>
    %79 = arith.mulf %77, %78 : vector<8x8xf32>
    %cst_34 = arith.constant dense<0xFF800000> : vector<8xf32>
    %80 = vector.multi_reduction <maximumf>, %79, %cst_34 [1] : vector<8x8xf32> to vector<8xf32>
    %81 = vector.shape_cast %80 : vector<8xf32> to vector<8x1xf32>
    %82 = vector.broadcast %81 : vector<8x1xf32> to vector<8x8xf32>
    %83 = arith.subf %79, %82 : vector<8x8xf32>
    %84 = math.exp %83 : vector<8x8xf32>
    %cst_35 = arith.constant dense<0.000000e+00> : vector<8xf32>
    %85 = vector.multi_reduction <add>, %84, %cst_35 [1] : vector<8x8xf32> to vector<8xf32>
    %86 = vector.shape_cast %85 : vector<8xf32> to vector<8x1xf32>
    %87 = vector.broadcast %86 : vector<8x1xf32> to vector<8x8xf32>
    %88 = arith.divf %84, %87 : vector<8x8xf32>
    %89 = vector.broadcast %74 : vector<1x32xf32> to vector<8x32xf32>
    %90 = arith.mulf %40, %89 : vector<8x32xf32>
    %cst_36 = arith.constant dense<0.000000e+00> : vector<8x32xf32>
    %91 = tpu.matmul %88, %90, %cst_36 {dimension_numbers = #tpu.dot_dimension_numbers<[1], [0], [0], [1], [0, 0, 1, 1], [], []>} : vector<8x8xf32>, vector<8x32xf32>, vector<8x32xf32> -> vector<8x32xf32>
    %92 = arith.addf %67, %91 : vector<8x32xf32>
    %c16_i32_37 = arith.constant 16 : i32
    %93 = vector.broadcast %c16_i32_37 : i32 to vector<1x32xi32>
    %94 = arith.cmpi sge, %41, %93 : vector<1x32xi32>
    %c24_i32 = arith.constant 24 : i32
    %95 = vector.broadcast %c24_i32 : i32 to vector<1x32xi32>
    %96 = arith.cmpi slt, %41, %95 : vector<1x32xi32>
    %97 = arith.andi %94, %96 : vector<1x32xi1>
    %98 = arith.extui %97 : vector<1x32xi1> to vector<1x32xi32>
    %99 = arith.sitofp %98 : vector<1x32xi32> to vector<1x32xf32>
    %100 = vector.broadcast %99 : vector<1x32xf32> to vector<8x32xf32>
    %101 = arith.mulf %30, %100 : vector<8x32xf32>
    %cst_38 = arith.constant dense<0.000000e+00> : vector<8x8xf32>
    %102 = tpu.matmul %101, %35, %cst_38 {dimension_numbers = #tpu.dot_dimension_numbers<[1], [1], [0], [0], [0, 0, 1, 0], [], []>} : vector<8x32xf32>, vector<8x32xf32>, vector<8x8xf32> -> vector<8x8xf32>
    %cst_39 = arith.constant 0.176776692 : f32
    %103 = vector.broadcast %cst_39 : f32 to vector<8x8xf32>
    %104 = arith.mulf %102, %103 : vector<8x8xf32>
    %cst_40 = arith.constant dense<0xFF800000> : vector<8xf32>
    %105 = vector.multi_reduction <maximumf>, %104, %cst_40 [1] : vector<8x8xf32> to vector<8xf32>
    %106 = vector.shape_cast %105 : vector<8xf32> to vector<8x1xf32>
    %107 = vector.broadcast %106 : vector<8x1xf32> to vector<8x8xf32>
    %108 = arith.subf %104, %107 : vector<8x8xf32>
    %109 = math.exp %108 : vector<8x8xf32>
    %cst_41 = arith.constant dense<0.000000e+00> : vector<8xf32>
    %110 = vector.multi_reduction <add>, %109, %cst_41 [1] : vector<8x8xf32> to vector<8xf32>
    %111 = vector.shape_cast %110 : vector<8xf32> to vector<8x1xf32>
    %112 = vector.broadcast %111 : vector<8x1xf32> to vector<8x8xf32>
    %113 = arith.divf %109, %112 : vector<8x8xf32>
    %114 = vector.broadcast %99 : vector<1x32xf32> to vector<8x32xf32>
    %115 = arith.mulf %40, %114 : vector<8x32xf32>
    %cst_42 = arith.constant dense<0.000000e+00> : vector<8x32xf32>
    %116 = tpu.matmul %113, %115, %cst_42 {dimension_numbers = #tpu.dot_dimension_numbers<[1], [0], [0], [1], [0, 0, 1, 1], [], []>} : vector<8x8xf32>, vector<8x32xf32>, vector<8x32xf32> -> vector<8x32xf32>
    %117 = arith.addf %92, %116 : vector<8x32xf32>
    %c24_i32_43 = arith.constant 24 : i32
    %118 = vector.broadcast %c24_i32_43 : i32 to vector<1x32xi32>
    %119 = arith.cmpi sge, %41, %118 : vector<1x32xi32>
    %c32_i32 = arith.constant 32 : i32
    %120 = vector.broadcast %c32_i32 : i32 to vector<1x32xi32>
    %121 = arith.cmpi slt, %41, %120 : vector<1x32xi32>
    %122 = arith.andi %119, %121 : vector<1x32xi1>
    %123 = arith.extui %122 : vector<1x32xi1> to vector<1x32xi32>
    %124 = arith.sitofp %123 : vector<1x32xi32> to vector<1x32xf32>
    %125 = vector.broadcast %124 : vector<1x32xf32> to vector<8x32xf32>
    %126 = arith.mulf %30, %125 : vector<8x32xf32>
    %cst_44 = arith.constant dense<0.000000e+00> : vector<8x8xf32>
    %127 = tpu.matmul %126, %35, %cst_44 {dimension_numbers = #tpu.dot_dimension_numbers<[1], [1], [0], [0], [0, 0, 1, 0], [], []>} : vector<8x32xf32>, vector<8x32xf32>, vector<8x8xf32> -> vector<8x8xf32>
    %cst_45 = arith.constant 0.176776692 : f32
    %128 = vector.broadcast %cst_45 : f32 to vector<8x8xf32>
    %129 = arith.mulf %127, %128 : vector<8x8xf32>
    %cst_46 = arith.constant dense<0xFF800000> : vector<8xf32>
    %130 = vector.multi_reduction <maximumf>, %129, %cst_46 [1] : vector<8x8xf32> to vector<8xf32>
    %131 = vector.shape_cast %130 : vector<8xf32> to vector<8x1xf32>
    %132 = vector.broadcast %131 : vector<8x1xf32> to vector<8x8xf32>
    %133 = arith.subf %129, %132 : vector<8x8xf32>
    %134 = math.exp %133 : vector<8x8xf32>
    %cst_47 = arith.constant dense<0.000000e+00> : vector<8xf32>
    %135 = vector.multi_reduction <add>, %134, %cst_47 [1] : vector<8x8xf32> to vector<8xf32>
    %136 = vector.shape_cast %135 : vector<8xf32> to vector<8x1xf32>
    %137 = vector.broadcast %136 : vector<8x1xf32> to vector<8x8xf32>
    %138 = arith.divf %134, %137 : vector<8x8xf32>
    %139 = vector.broadcast %124 : vector<1x32xf32> to vector<8x32xf32>
    %140 = arith.mulf %40, %139 : vector<8x32xf32>
    %cst_48 = arith.constant dense<0.000000e+00> : vector<8x32xf32>
    %141 = tpu.matmul %138, %140, %cst_48 {dimension_numbers = #tpu.dot_dimension_numbers<[1], [0], [0], [1], [0, 0, 1, 1], [], []>} : vector<8x8xf32>, vector<8x32xf32>, vector<8x32xf32> -> vector<8x32xf32>
    %142 = arith.addf %117, %141 : vector<8x32xf32>
    %c0_49 = arith.constant 0 : index
    %c0_50 = arith.constant 0 : index
    %143 = vector.load %arg10[%c0_49, %c0_50] : memref<32x32xf32, #tpu.memory_space<vmem>>, vector<32x32xf32>
    %cst_51 = arith.constant dense<0.000000e+00> : vector<8x32xf32>
    %144 = tpu.matmul %142, %143, %cst_51 {dimension_numbers = #tpu.dot_dimension_numbers<[1], [0], [0], [1], [0, 0, 1, 1], [], []>} : vector<8x32xf32>, vector<32x32xf32>, vector<8x32xf32> -> vector<8x32xf32>
    %c0_52 = arith.constant 0 : index
    %c0_53 = arith.constant 0 : index
    %145 = vector.load %arg11[%c0_52, %c0_53] : memref<1x32xf32, #tpu.memory_space<vmem>>, vector<1x32xf32>
    %146 = vector.broadcast %145 : vector<1x32xf32> to vector<8x32xf32>
    %147 = arith.addf %144, %146 : vector<8x32xf32>
    %148 = arith.addf %1, %147 : vector<8x32xf32>
    %c0_54 = arith.constant 0 : index
    %c0_55 = arith.constant 0 : index
    %149 = vector.load %arg12[%c0_54, %c0_55] : memref<1x32xf32, #tpu.memory_space<vmem>>, vector<1x32xf32>
    %c0_56 = arith.constant 0 : index
    %c0_57 = arith.constant 0 : index
    %150 = vector.load %arg13[%c0_56, %c0_57] : memref<1x32xf32, #tpu.memory_space<vmem>>, vector<1x32xf32>
    %cst_58 = arith.constant dense<0.000000e+00> : vector<8xf32>
    %151 = vector.multi_reduction <add>, %148, %cst_58 [1] : vector<8x32xf32> to vector<8xf32>
    %152 = vector.shape_cast %151 : vector<8xf32> to vector<8x1xf32>
    %cst_59 = arith.constant 3.200000e+01 : f32
    %153 = vector.broadcast %cst_59 : f32 to vector<8x1xf32>
    %154 = arith.divf %152, %153 : vector<8x1xf32>
    %155 = vector.broadcast %154 : vector<8x1xf32> to vector<8x32xf32>
    %156 = arith.subf %148, %155 : vector<8x32xf32>
    %157 = arith.mulf %156, %156 : vector<8x32xf32>
    %cst_60 = arith.constant dense<0.000000e+00> : vector<8xf32>
    %158 = vector.multi_reduction <add>, %157, %cst_60 [1] : vector<8x32xf32> to vector<8xf32>
    %159 = vector.shape_cast %158 : vector<8xf32> to vector<8x1xf32>
    %cst_61 = arith.constant 3.200000e+01 : f32
    %160 = vector.broadcast %cst_61 : f32 to vector<8x1xf32>
    %161 = arith.divf %159, %160 : vector<8x1xf32>
    %162 = vector.broadcast %154 : vector<8x1xf32> to vector<8x32xf32>
    %163 = arith.subf %148, %162 : vector<8x32xf32>
    %cst_62 = arith.constant 9.99999974E-6 : f32
    %164 = vector.broadcast %cst_62 : f32 to vector<8x1xf32>
    %165 = arith.addf %161, %164 : vector<8x1xf32>
    %166 = math.rsqrt %165 : vector<8x1xf32>
    %167 = vector.broadcast %166 : vector<8x1xf32> to vector<8x32xf32>
    %168 = arith.mulf %163, %167 : vector<8x32xf32>
    %169 = vector.broadcast %149 : vector<1x32xf32> to vector<8x32xf32>
    %170 = arith.mulf %168, %169 : vector<8x32xf32>
    %171 = vector.broadcast %150 : vector<1x32xf32> to vector<8x32xf32>
    %172 = arith.addf %170, %171 : vector<8x32xf32>
    %c0_63 = arith.constant 0 : index
    %c0_64 = arith.constant 0 : index
    %173 = vector.load %arg14[%c0_63, %c0_64] : memref<32x64xf32, #tpu.memory_space<vmem>>, vector<32x64xf32>
    %cst_65 = arith.constant dense<0.000000e+00> : vector<8x64xf32>
    %174 = tpu.matmul %172, %173, %cst_65 {dimension_numbers = #tpu.dot_dimension_numbers<[1], [0], [0], [1], [0, 0, 1, 1], [], []>} : vector<8x32xf32>, vector<32x64xf32>, vector<8x64xf32> -> vector<8x64xf32>
    %c0_66 = arith.constant 0 : index
    %c0_67 = arith.constant 0 : index
    %175 = vector.load %arg15[%c0_66, %c0_67] : memref<1x64xf32, #tpu.memory_space<vmem>>, vector<1x64xf32>
    %176 = vector.broadcast %175 : vector<1x64xf32> to vector<8x64xf32>
    %177 = arith.addf %174, %176 : vector<8x64xf32>
    %cst_68 = arith.constant 5.000000e-01 : f32
    %178 = vector.broadcast %cst_68 : f32 to vector<8x64xf32>
    %179 = arith.mulf %178, %177 : vector<8x64xf32>
    %cst_69 = arith.constant 4.471500e-02 : f32
    %180 = vector.broadcast %cst_69 : f32 to vector<8x64xf32>
    %181 = arith.mulf %180, %177 : vector<8x64xf32>
    %182 = arith.mulf %181, %177 : vector<8x64xf32>
    %183 = arith.mulf %182, %177 : vector<8x64xf32>
    %184 = arith.addf %177, %183 : vector<8x64xf32>
    %cst_70 = arith.constant 0.797884583 : f32
    %185 = vector.broadcast %cst_70 : f32 to vector<8x64xf32>
    %186 = arith.mulf %185, %184 : vector<8x64xf32>
    %187 = math.tanh %186 : vector<8x64xf32>
    %cst_71 = arith.constant 1.000000e+00 : f32
    %188 = vector.broadcast %cst_71 : f32 to vector<8x64xf32>
    %189 = arith.addf %188, %187 : vector<8x64xf32>
    %190 = arith.mulf %179, %189 : vector<8x64xf32>
    %c0_72 = arith.constant 0 : index
    %c0_73 = arith.constant 0 : index
    %191 = vector.load %arg16[%c0_72, %c0_73] : memref<64x32xf32, #tpu.memory_space<vmem>>, vector<64x32xf32>
    %cst_74 = arith.constant dense<0.000000e+00> : vector<8x32xf32>
    %192 = tpu.matmul %190, %191, %cst_74 {dimension_numbers = #tpu.dot_dimension_numbers<[1], [0], [0], [1], [0, 0, 1, 1], [], []>} : vector<8x64xf32>, vector<64x32xf32>, vector<8x32xf32> -> vector<8x32xf32>
    %c0_75 = arith.constant 0 : index
    %c0_76 = arith.constant 0 : index
    %193 = vector.load %arg17[%c0_75, %c0_76] : memref<1x32xf32, #tpu.memory_space<vmem>>, vector<1x32xf32>
    %194 = vector.broadcast %193 : vector<1x32xf32> to vector<8x32xf32>
    %195 = arith.addf %192, %194 : vector<8x32xf32>
    %cst_77 = arith.constant 5.000000e-01 : f32
    %196 = vector.broadcast %cst_77 : f32 to vector<8x32xf32>
    %197 = arith.mulf %196, %195 : vector<8x32xf32>
    %cst_78 = arith.constant 4.471500e-02 : f32
    %198 = vector.broadcast %cst_78 : f32 to vector<8x32xf32>
    %199 = arith.mulf %198, %195 : vector<8x32xf32>
    %200 = arith.mulf %199, %195 : vector<8x32xf32>
    %201 = arith.mulf %200, %195 : vector<8x32xf32>
    %202 = arith.addf %195, %201 : vector<8x32xf32>
    %cst_79 = arith.constant 0.797884583 : f32
    %203 = vector.broadcast %cst_79 : f32 to vector<8x32xf32>
    %204 = arith.mulf %203, %202 : vector<8x32xf32>
    %205 = math.tanh %204 : vector<8x32xf32>
    %cst_80 = arith.constant 1.000000e+00 : f32
    %206 = vector.broadcast %cst_80 : f32 to vector<8x32xf32>
    %207 = arith.addf %206, %205 : vector<8x32xf32>
    %208 = arith.mulf %197, %207 : vector<8x32xf32>
    %209 = arith.addf %148, %208 : vector<8x32xf32>
    %c0_81 = arith.constant 0 : index
    %c0_82 = arith.constant 0 : index
    %c0_83 = arith.constant 0 : index
    %210 = vector.load %arg18[%c0_81, %c0_82, %c0_83] : memref<1x8x32xf32, #tpu.memory_space<vmem>>, vector<1x8x32xf32>
    %211 = vector.shape_cast %210 : vector<1x8x32xf32> to vector<8x32xf32>
    %212 = vector.shape_cast %209 : vector<8x32xf32> to vector<1x8x32xf32>
    tpu.vector_store %arg18[%c0_81, %c0_82, %c0_83], %212 {strides = array<i32>} : memref<1x8x32xf32, #tpu.memory_space<vmem>>, vector<1x8x32xf32>,
    return
  }
  func.func @transform_0(%arg0: i32) -> (i32, i32, i32) {
    %c0_i32 = arith.constant 0 : i32
    %c0_i32_0 = arith.constant 0 : i32
    %c0_i32_1 = arith.constant 0 : i32
    return %arg0, %c0_i32, %c0_i32_0 : i32, i32, i32
  }
  func.func @transform_1(%arg0: i32) -> (i32, i32) {
    %c0_i32 = arith.constant 0 : i32
    %c0_i32_0 = arith.constant 0 : i32
    %c0_i32_1 = arith.constant 0 : i32
    return %c0_i32, %c0_i32_0 : i32, i32
  }
  func.func @transform_2(%arg0: i32) -> (i32, i32) {
    %c0_i32 = arith.constant 0 : i32
    %c0_i32_0 = arith.constant 0 : i32
    %c0_i32_1 = arith.constant 0 : i32
    return %c0_i32, %c0_i32_0 : i32, i32
  }
  func.func @transform_3(%arg0: i32) -> (i32, i32) {
    %c0_i32 = arith.constant 0 : i32
    %c0_i32_0 = arith.constant 0 : i32
    %c0_i32_1 = arith.constant 0 : i32
    return %c0_i32, %c0_i32_0 : i32, i32
  }
  func.func @transform_4(%arg0: i32) -> (i32, i32) {
    %c0_i32 = arith.constant 0 : i32
    %c0_i32_0 = arith.constant 0 : i32
    %c0_i32_1 = arith.constant 0 : i32
    return %c0_i32, %c0_i32_0 : i32, i32
  }
  func.func @transform_5(%arg0: i32) -> (i32, i32) {
    %c0_i32 = arith.constant 0 : i32
    %c0_i32_0 = arith.constant 0 : i32
    %c0_i32_1 = arith.constant 0 : i32
    return %c0_i32, %c0_i32_0 : i32, i32
  }
  func.func @transform_6(%arg0: i32) -> (i32, i32) {
    %c0_i32 = arith.constant 0 : i32
    %c0_i32_0 = arith.constant 0 : i32
    %c0_i32_1 = arith.constant 0 : i32
    return %c0_i32, %c0_i32_0 : i32, i32
  }
  func.func @transform_7(%arg0: i32) -> (i32, i32) {
    %c0_i32 = arith.constant 0 : i32
    %c0_i32_0 = arith.constant 0 : i32
    %c0_i32_1 = arith.constant 0 : i32
    return %c0_i32, %c0_i32_0 : i32, i32
  }
  func.func @transform_8(%arg0: i32) -> (i32, i32) {
    %c0_i32 = arith.constant 0 : i32
    %c0_i32_0 = arith.constant 0 : i32
    %c0_i32_1 = arith.constant 0 : i32
    return %c0_i32, %c0_i32_0 : i32, i32
  }
  func.func @transform_9(%arg0: i32) -> (i32, i32) {
    %c0_i32 = arith.constant 0 : i32
    %c0_i32_0 = arith.constant 0 : i32
    %c0_i32_1 = arith.constant 0 : i32
    return %c0_i32, %c0_i32_0 : i32, i32
  }
  func.func @transform_10(%arg0: i32) -> (i32, i32) {
    %c0_i32 = arith.constant 0 : i32
    %c0_i32_0 = arith.constant 0 : i32
    %c0_i32_1 = arith.constant 0 : i32
    return %c0_i32, %c0_i32_0 : i32, i32
  }
  func.func @transform_11(%arg0: i32) -> (i32, i32) {
    %c0_i32 = arith.constant 0 : i32
    %c0_i32_0 = arith.constant 0 : i32
    %c0_i32_1 = arith.constant 0 : i32
    return %c0_i32, %c0_i32_0 : i32, i32
  }
  func.func @transform_12(%arg0: i32) -> (i32, i32) {
    %c0_i32 = arith.constant 0 : i32
    %c0_i32_0 = arith.constant 0 : i32
    %c0_i32_1 = arith.constant 0 : i32
    return %c0_i32, %c0_i32_0 : i32, i32
  }
  func.func @transform_13(%arg0: i32) -> (i32, i32) {
    %c0_i32 = arith.constant 0 : i32
    %c0_i32_0 = arith.constant 0 : i32
    %c0_i32_1 = arith.constant 0 : i32
    return %c0_i32, %c0_i32_0 : i32, i32
  }
  func.func @transform_14(%arg0: i32) -> (i32, i32) {
    %c0_i32 = arith.constant 0 : i32
    %c0_i32_0 = arith.constant 0 : i32
    %c0_i32_1 = arith.constant 0 : i32
    return %c0_i32, %c0_i32_0 : i32, i32
  }
  func.func @transform_15(%arg0: i32) -> (i32, i32) {
    %c0_i32 = arith.constant 0 : i32
    %c0_i32_0 = arith.constant 0 : i32
    %c0_i32_1 = arith.constant 0 : i32
    return %c0_i32, %c0_i32_0 : i32, i32
  }
  func.func @transform_16(%arg0: i32) -> (i32, i32) {
    %c0_i32 = arith.constant 0 : i32
    %c0_i32_0 = arith.constant 0 : i32
    %c0_i32_1 = arith.constant 0 : i32
    return %c0_i32, %c0_i32_0 : i32, i32
  }
  func.func @transform_17(%arg0: i32) -> (i32, i32, i32) {
    %c0_i32 = arith.constant 0 : i32
    %c0_i32_0 = arith.constant 0 : i32
    %c0_i32_1 = arith.constant 0 : i32
    return %arg0, %c0_i32, %c0_i32_0 : i32, i32, i32
  }
}

</mosaic_0001>

<bundles_post_ra>
// kernel: tpu_custom_call.1
= control target key start
LH: loop header
LB: loop body
LE: loop exit
PB: predicated region body
PF: predicated region fallthrough
CT: control target
= control target key end

     0   :  { %s2880_s0 = inlined_call_operand.hbm [shape: f32[2,8,32], index: 0, kind: input, shape index: {}]   ;;  %s2881_s1 = inlined_call_operand.vmem [shape: f32[1,32], index: 1, kind: input, shape index: {}]   ;;  %s2882_s2 = inlined_call_operand.vmem [shape: f32[1,32], index: 2, kind: input, shape index: {}]   ;;  %s2883_s3 = inlined_call_operand.vmem [shape: f32[32,32], index: 3, kind: input, shape index: {}]   ;;  %s2884_s4 = inlined_call_operand.vmem [shape: f32[1,32], index: 4, kind: input, shape index: {}]   ;;  %s2885_s5 = inlined_call_operand.vmem [shape: f32[32,32], index: 5, kind: input, shape index: {}]   ;;  %s2886_s6 = inlined_call_operand.vmem [shape: f32[1,32], index: 6, kind: input, shape index: {}]   ;;  %s2887_s7 = inlined_call_operand.vmem [shape: f32[32,32], index: 7, kind: input, shape index: {}]   ;;  %s2888_s8 = inlined_call_operand.vmem [shape: f32[1,32], index: 8, kind: input, shape index: {}]   ;;  %s2889_s9 = inlined_call_operand.hbm [shape: f32[32,32], index: 9, kind: input, shape index: {}]   ;;  %s2890_s10 = inlined_call_operand.vmem [shape: f32[1,32], index: 10, kind: input, shape index: {}]   ;;  %s2891_s11 = inlined_call_operand.vmem [shape: f32[1,32], index: 11, kind: input, shape index: {}]   ;;  %s2892_s12 = inlined_call_operand.vmem [shape: f32[1,32], index: 12, kind: input, shape index: {}]   ;;  %s2893_s13 = inlined_call_operand.hbm [shape: f32[32,64], index: 13, kind: input, shape index: {}]   ;;  %s2894_s14 = inlined_call_operand.vmem [shape: f32[1,64], index: 14, kind: input, shape index: {}]   ;;  %s2895_s15 = inlined_call_operand.vmem [shape: f32[64,32], index: 15, kind: input, shape index: {}]   ;;  %s2896_s16 = inlined_call_operand.vmem [shape: f32[1,32], index: 16, kind: input, shape index: {}]   ;;  %s2897_s17 = inlined_call_operand.hbm [shape: f32[2,8,32], index: 17, kind: output, shape index: {}]  }
   0x1   :  { %2912 = sst [smem:[#allocation19_spill]] %s2880_s0 }
   0x2   :  { %2913 = sst [smem:[#allocation20_spill]] %s2881_s1 }
   0x3   :  { %2914 = sst [smem:[#allocation21_spill]] %s2889_s9 }
   0x4   :  { %2915 = sst [smem:[#allocation22_spill]] %s2893_s13 }
   0x5   :  { %2916 = sst [smem:[#allocation23_spill]] %s2896_s16 }
   0x6   :  { %2917 = sst [smem:[#allocation24_spill]] %s2897_s17 }
   0x7   :  { %22 = vsyncpa [#allocation3], 0 }
   0x8   :  { %24 = vsyncpa [#allocation3 + $0x1], 0 }
   0x9   :  { %25 = vsyncpa [#allocation6], 0 }
   0xa   :  { %26 = vsyncpa [#allocation4], 0 }
   0xb   :  { %28 = vsyncpa [#allocation4 + $0x1], 0  ;;  %s2504_s24 = smov 0   ;;  %s2506_s25 = smov 0  }
   0xc   :  { %s2508_s26 = smov 0   ;;  %s2510_s27 = smov 0  }
   0xd LB: > { %2918 = sst [smem:[#allocation12_spill]] %s2392_s24  ;;  %s2525_s28 = sadd.s32 4294967295, %s2404_s27   ;;  %s2404_s27 = sphi %s2510_s27, %s2950_s27   ;;  %s2400_s26 = sphi %s2508_s26, %s2952_s26   ;;  %s2396_s25 = sphi %s2506_s25, %s2954_s25   ;;  %s2392_s24 = sphi %s2504_s24, %s2953_s24  }
   0xe   : > { %2919 = sst [smem:[#allocation13_spill]] %s2400_s26  ;;  %s1949_s29 = sadd.s32 4294967294, %s2404_s27  }
   0xf   : > { %2920 = sst [smem:[#allocation14_spill]] %s2404_s27  ;;  %p54_p0 = scmp.ne.s32.totalorder %s2396_s25, %s2392_s24 }
  0x10   : > { %p2901_p1 = scmp.eq.s32.totalorder %s2525_s28, 0  ;;  %p420_p3 = scmp.eq.s32.totalorder %s1949_s29, 1 }
  0x11   : > { %p1950_p5 = scmp.ge.s32.totalorder %s2404_s27, 1  ;;  %p427_p7 = scmp.lt.s32.totalorder %s2404_s27, 3 }
  0x12   : > { %p2534_p4 = por %p2901_p1, %p54_p0  ;;  %p2539_p6 = por %p420_p3, %p54_p0 }
  0x13   : > { %p2544_p8 = pnand %p1950_p5, %p427_p7  ;;  %s2406_s19 = smov [#allocation5]  }
  0x14   : > { %s2921_s0 = scalar_select %p2534_p4, 1, 0 }
  0x15   : > { %s2922_s30 = scalar_select %p2539_p6, 1, 0 }
  0x16   : > { %s2924_s18 = scalar_select %p2544_p8, 1, 0 }
  0x17   : > { %2923 = sst [smem:[#allocation15_spill]] %s2922_s30  ;;  %s463_s1 = sshll.u32 %s2406_s19, 4  ;;  %s464_s1 = int_to_ptr.vmem [resolvable:$true] %s463_s1 }
  0x18   : > { %p2173_p9 = pneg %p2544_p8  ;;  %s2407_s21 = smov [#allocation7]  }
  0x19   : > { %s485_s22 = sshll.u32 %s2407_s21, 4  ;;  %s2267_s23 = scalar_lea.vmem %s464_s1, 512  ;;  %s486_s22 = int_to_ptr.vmem [resolvable:$true] %s485_s22 }
  0x1a   : > { %p2553_p11 = pnand %p2173_p9, %p2901_p1  ;;  %p2268_p13 = scmp.ne.s32.totalorder %s464_s1, %s2267_s23 }
  0x1b   : > { %p2275_p5 = scmp.lt.s32.totalorder %s464_s1, %s464_s1  ;;  %p2276_p7 = scmp.lt.s32.totalorder %s2267_s23, %s2267_s23 }
  0x1c   : > { %p2258_p12 = pneg %p2553_p11 }
  0x1d   : > { %p2277_p10 = por %p2276_p7, %p2275_p5 }
  0x1e   : > { %p2270_p0 = pnand %p2268_p13, %p2258_p12 }
  0x20   : > { %p2271_p3 = pneg %p2270_p0 }
  0x22   : > { %p2278_p9 = pnand %p2277_p10, %p2271_p3 }
  0x24   : > { %2281 = shalt.err (!%p2278_p9)
}
  0x25   : > { %s2408_s29 = smov 128   ;;  %s2409_s19 = smov 8  }
  0x26   : > { %s2926_s9 = sld [smem:[#allocation21_spill]]  ;;  %s2293_s24 = scalar_lea.vmem %s486_s22, 512 }
  0x27   : > { %p2294_p1 = scmp.ne.s32.totalorder %s486_s22, %s2293_s24  ;;  %p2301_p2 = scmp.lt.s32.totalorder %s486_s22, %s486_s22 }
  0x28   : > { %p2302_p6 = scmp.lt.s32.totalorder %s2293_s24, %s2293_s24 }
  0x29   : > { %p2296_p13 = pnand %p2294_p1, %p2258_p12 }
  0x2a   : > { %p2303_p5 = por %p2302_p6, %p2301_p2 }
  0x2b   : > { %p2297_p0 = pneg %p2296_p13 }
  0x2c   : > { %2176 = dma.hbm_to_vmem [thread:$0]  (!%p2553_p11), %s2926_s9, 512, %s464_s1, [#allocation6], %s2408_s29, %s2408_s29, %s2409_s19  }
  0x2d   : > { %p2304_p10 = pnand %p2303_p5, %p2297_p0 }
  0x2f   : > { %2307 = shalt.err (!%p2304_p10)
}
  0x30   : > { %s2927_s13 = sld [smem:[#allocation22_spill]]  ;;  %s2576_s24 = sadd.s32 1, %s2404_s27  }
  0x31   : > { %2928 = sst [smem:[#allocation16_spill]] %s2576_s24  ;;  %s41_s30 = sadd.s32 1, %s2400_s26 }
  0x32   : > { %s38_s1 = ssub.s32 %s2404_s27, %s2576_s24  ;;  %p48_p1 = scmp.ne.s32.totalorder %s2400_s26, %s2396_s25 }
  0x33   : > { %p39_p2 = scmp.eq.s32.totalorder %s38_s1, 0  ;;  %p49_p6 = scmp.eq.s32.totalorder %s2404_s27, 0 }
  0x34   : > { %p2929_p12 = scmp.eq.s32.totalorder %s2525_s28, 1  ;;  %p2190_p7 = scmp.lt.s32.totalorder %s2404_s27, 2 }
  0x35   : > { %s2592_s20 = scalar_select %p39_p2, %s2400_s26, %s41_s30  }
  0x36   : > { %2179 = dma.hbm_to_vmem [thread:$0]  (!%p2553_p11), %s2927_s13, 512, %s486_s22, [#allocation6], %s2408_s29, %s2408_s29, %s2409_s19  }
  0x37   : > { %p2586_p3 = por %p2929_p12, %p48_p1  ;;  %2932 = sst [smem:[#allocation18_spill]] %s2592_s20 }
  0x38   : > { %p50_p9 = por %p49_p6, %p48_p1  ;;  %s508_s21 = sand.u32 1, %s2400_s26  }
  0x39   : > { %s2930_s17 = scalar_select %p2586_p3, 1, 0 }
  0x3a   : > { %s1954_s23 = sshll.u32 %s508_s21, 3  ;;  %s1955_s22 = sshll.u32 %s2404_s27, 7 }
  0x3b   : > { %2931 = sst [smem:[#allocation17_spill]] %s2930_s17  ;;  %s512_s1 = scalar_lea.vmem [#allocation2], %s1954_s23 }
  0x3c   : > { %s2933_s9 = sld [smem:[#allocation19_spill]]  ;;  %s519_s24 = sshll.u32 %s512_s1, 4  ;;  %s520_s24 = int_to_ptr.vmem [resolvable:$true] %s519_s24 }
  0x3d   : > { %p2601_p11 = pnand %p2190_p7, %p50_p9  ;;  %s509_s30 = scalar_lea.sflag [#allocation3], %s508_s21 }
  0x3f   : > { %p2310_p0 = pneg %p2601_p11 }
  0x42   : > { %s2599_s13 = scalar_lea.hbm %s2933_s9, %s1955_s22  ;;  %s2313_s19 = scalar_lea.hbm %s2933_s9, 256 }
  0x43   : > { %s2308_s20 = scalar_lea.hbm %s2599_s13, 128  ;;  %p2314_p1 = scmp.lt.s32.totalorder %s2599_s13, %s2933_s9 }
  0x44   : > { %p2309_p13 = scmp.ne.s32.totalorder %s2599_s13, %s2308_s20  ;;  %p2315_p2 = scmp.lt.s32.totalorder %s2313_s19, %s2308_s20 }
  0x46   : > { %p2311_p5 = pnand %p2310_p0, %p2309_p13  ;;  %p2316_p6 = por %p2315_p2, %p2314_p1 }
  0x48   : > { %p2312_p10 = pneg %p2311_p5 }
  0x4a   : > { %p2317_p12 = pnand %p2316_p6, %p2312_p10 }
  0x4c   : > { %2320 = shalt.err (!%p2317_p12)
}
  0x4d   : > { %s2321_s1 = scalar_lea.vmem %s520_s24, 128  ;;  %s2410_s21 = smov [#allocation2]  }
  0x4e   : > { %p2322_p7 = scmp.ne.s32.totalorder %s520_s24, %s2321_s1  ;;  %s2326_s27 = sshll.u32 %s2410_s21, 4  ;;  %s2327_s27 = int_to_ptr.vmem [resolvable:$false] %s2326_s27 }
  0x4f   : > { %s2328_s16 = scalar_lea.vmem %s2327_s27, 256  ;;  %p2329_p13 = scmp.lt.s32.totalorder %s520_s24, %s2327_s27 }
  0x50   : > { %p2324_p9 = pnand %p2322_p7, %p2310_p0  ;;  %p2330_p5 = scmp.lt.s32.totalorder %s2328_s16, %s2321_s1 }
  0x52   : > { %p2325_p3 = pneg %p2324_p9  ;;  %p2331_p4 = por %p2330_p5, %p2329_p13 }
  0x54   : > { %p2332_p8 = pnand %p2331_p4, %p2325_p3 }
  0x56   : > { %2335 = shalt.err (!%p2332_p8)
}
  0x57   : > { %2183 = dma.hbm_to_vmem [thread:$0]  (!%p2601_p11), %s2599_s13, 128, %s520_s24, %s509_s30  }
  0x58   : > { %p2935_p10 = scmp.ne.s32.totalorder %s2924_s18, 0 }
  0x59   : > { %s2622_s26 = sand.u32 (!%p2935_p10), 1, %s2396_s25   ;;  %p2936_p4 = scmp.ne.s32.totalorder (!%p2935_p10), %s2921_s0, 0 }
  0x5a   : > { %528 = sbr.rel (%p2935_p10) target bundleno = 2801 (0xaf1), region = 88  ;;  %s1957_s20 = sshll.u32 (!%p2935_p10), %s2622_s26, 3 }
  0x5b   : > { %s531_s27 = scalar_lea.sflag (!%p2935_p10), [#allocation3], %s2622_s26  ;;  %s534_s16 = scalar_lea.vmem (!%p2935_p10), [#allocation2], %s1957_s20 }
  0x5f   : > { %2379 = dma.done.wait (%p2936_p4), %s531_s27, 128  }
  0x60   : > { %2381 = vsyncadd (%p2936_p4), %s531_s27, 4294967168  ;;  %p2937_p8 = scmp.eq.s32.totalorder %s2525_s28, 0 }
  0x62   : > { %2383 = dma.done.wait (%p2937_p8), [#allocation6], 1024   ;;  %p2938_p3 = pmov %p2937_p8 }
  0x63   : > { %vm596_vm0 = vcmask 261120   ;;  %v2636_v0 = vld [vmem:[%s534_s16] sm:$0xff]  ;;  %v628_v7 = vld [vmem:[%s2883_s3 + $0x18] sm:$0xff]  ;;  %v2411_v9 = vmov 0.0   ;;  %v627_v10 = vld [vmem:[%s2883_s3 + $0x10] sm:$0xff]  ;;  %vm2412_vm1 = vmmov 0   ;;  %v871_v29 = vlaneseq }
  0x64   : > { %2385 = vsyncadd (%p2938_p3), [#allocation6], 4294966272  ;;  %v597_v1 = vsel %vm596_vm0, %v2636_v0, 0.0  ;;  %v793_v8 = vld [vmem:[%s2887_s7 + $0x18] sm:$0xff]  ;;  %2047 = vmatprep.subr.mxu1 %v2411_v9  ;;  %2069 = vmatprep.subr.mxu0 %v2411_v9  ;;  %v792_v11 = vld [vmem:[%s2887_s7 + $0x10] sm:$0xff]  ;;  %s2939_s17 = sld [smem:[#allocation20_spill]] }
  0x65   : > { %598 = vadd.xlane.f32.xlu0 %v597_v1  ;;  %2048 = vmatpush3.msra.mxu1 %v628_v7  ;;  %v626_v12 = vld [vmem:[%s2883_s3 + $0x8] sm:$0xff]  ;;  %v625_v14 = vld [vmem:[%s2883_s3] sm:$0xff]  ;;  %v712_v25 = vld [vmem:[%s2885_s5 + $0x18] sm:$0xff]  ;;  %v872_v30 = vand.u32 127, %v871_v29  ;;  %vm956_vm12 = vcmask 64512   ;;  %vm1761_vm13 = vcmask 523264  }
  0x66   : > { %2070 = vmatpush3.msra.mxu0 %v793_v8  ;;  %2049 = vmatprep.subr.mxu1 %v2411_v9  ;;  %v791_v13 = vld [vmem:[%s2887_s7 + $0x8] sm:$0xff]  ;;  %v790_v15 = vld [vmem:[%s2887_s7] sm:$0xff]  ;;  %v711_v26 = vld [vmem:[%s2885_s5 + $0x10] sm:$0xff]  ;;  %s2940_s30 = sld [smem:[#allocation23_spill]]  ;;  %s1994_s29 = sshll.u32 %s2525_s28, 7 }
  0x67   : > { %2071 = vmatprep.subr.mxu0 %v2411_v9  ;;  %2050 = vmatpush3.msra.mxu1 %v627_v10  ;;  %v1962_v22 = vld [vmem:[%s2882_s2] ss:$0 sm:$0xff]  ;;  %v710_v27 = vld [vmem:[%s2885_s5 + $0x8] sm:$0xff]  ;;  %vm1207_vm2 = vcmp.ge.s32.totalorder %v872_v30, 16  ;;  %vm1208_vm3 = vcmp.lt.s32.totalorder %v872_v30, 24  ;;  %vm1373_vm4 = vcmp.ge.s32.totalorder %v872_v30, 24 }
  0x68   : > { %2072 = vmatpush3.msra.mxu0 %v792_v11  ;;  %2051 = vmatprep.subr.mxu1 %v2411_v9  ;;  %v709_v28 = vld [vmem:[%s2885_s5] sm:$0xff]  ;;  %vm1374_vm5 = vcmp.lt.s32.totalorder %v872_v30, 32  ;;  %vm969_vm6 = vcmp.ge.s32.totalorder %v872_v30, 8  ;;  %vm970_vm7 = vcmp.lt.s32.totalorder %v872_v30, 16  ;;  %vm1209_vm8 = vmand %vm1207_vm2, %vm1208_vm3  ;;  %vm874_vm11 = vcmp.lt.s32.totalorder %v872_v30, 8  ;;  %s2941_s22 = sld [smem:[#allocation17_spill]] }
  0x69   : > { %2073 = vmatprep.subr.mxu0 %v2411_v9  ;;  %2052 = vmatpush3.msra.mxu1 %v626_v12  ;;  %vm1375_vm9 = vmand %vm1373_vm4, %vm1374_vm5  ;;  %v1963_v31 = vld [vmem:[%s2884_s4] ss:$0 sm:$0xff]  ;;  %v1977_v34 = vsel %vm1209_vm8, 1.0, %v2411_v9  ;;  %v1969_v49 = vsel %vm874_vm11, 1.0, %v2411_v9  ;;  %s592_s19 = scalar_lea.vmem [#allocation8], %s1957_s20  ;;  %s2942_s27 = sld [smem:[#allocation24_spill]] }
  0x6a   : > { %2074 = vmatpush3.msra.mxu0 %v791_v13  ;;  %2053 = vmatprep.subr.mxu1 %v2411_v9  ;;  %v1961_v20 = vld [vmem:[%s2939_s17] ss:$0 sm:$0xff]  ;;  %vm971_vm10 = vmand %vm969_vm6, %vm970_vm7  ;;  %v1981_v35 = vsel %vm1375_vm9, 1.0, %v2411_v9  ;;  %s1860_s23 = sshll.u32 %s592_s19, 4  ;;  %s1847_s0 = scalar_lea.sflag [#allocation4], %s2622_s26  ;;  %s1861_s23 = int_to_ptr.vmem [resolvable:$true] %s1860_s23 }
  0x6b   : > { %2075 = vmatprep.subr.mxu0 %v2411_v9  ;;  %2054 = vmatpush3.msra.mxu1 %v625_v14  ;;  %v1967_v32 = vld [vmem:[%s2888_s8] ss:$0 sm:$0xff]  ;;  %v1972_v38 = vsel %vm971_vm10, 1.0, %v2411_v9  ;;  %s2336_s18 = scalar_lea.vmem %s1861_s23, 128  ;;  %s2413_s28 = smov [#allocation8]  }
  0x6c   : > { %2055 = vmatprep.mubr.msk.f32.mxu1 %vm2412_vm1, %v2411_v9  ;;  %2058 = vmatprep.subr.mxu1 %v2411_v9  ;;  %v1965_v47 = vld [vmem:[%s2886_s6] ss:$0 sm:$0xff]  ;;  %p2337_p11 = scmp.ne.s32.totalorder %s1861_s23, %s2336_s18  ;;  %s2340_s24 = sshll.u32 %s2413_s28, 4  ;;  %s2341_s24 = int_to_ptr.vmem [resolvable:$false] %s2340_s24 }
  0x6d   : > { %2076 = vmatpush3.msra.mxu0 %v790_v15  ;;  %2077 = vmatprep.mubr.msk.f32.mxu0 %vm2412_vm1, %v2411_v9  ;;  %s2342_s20 = scalar_lea.vmem %s2341_s24, 256  ;;  %p2343_p6 = scmp.lt.s32.totalorder %s1861_s23, %s2341_s24 }
  0x6e   : > { %2090 = vmatprep.subr.mxu0 %v2411_v9  ;;  %p2944_p0 = scmp.ne.s32.totalorder %s2941_s22, 0  ;;  %p2344_p12 = scmp.lt.s32.totalorder %s2342_s20, %s2336_s18 }
  0x6f   : > { %s2943_s16 = smov %s2942_s27  ;;  %s1858_s13 = scalar_lea.hbm %s2942_s27, %s1994_s29 }
  0x70   : > { %p2338_p1 = pnand %p2337_p11, %p2944_p0  ;;  %p2345_p7 = por %p2344_p12, %p2343_p6 }
  0x72   : > { %p2339_p2 = pneg %p2338_p1 }
  0x74   : > { %p2346_p9 = pnand %p2345_p7, %p2339_p2 }
  0xee   : > { %v599_v2 = vpop.xlane.xlu0 %598 }
  0xef   : > { %v601_v3 = vmul.f32 0.03125, %v599_v2 }
  0xf1   : > { %v602_v4 = vsub.f32 %v2636_v0, %v601_v3 }
  0xf3   : > { %v603_v5 = vmul.f32 %v602_v4, %v602_v4 }
  0xf5   : > { %v604_v6 = vsel %vm596_vm0, %v603_v5, 0.0 }
  0xf6   : > { %605 = vadd.xlane.f32.xlu0 %v604_v6 }
 0x17f   : > { %v606_v16 = vpop.xlane.xlu0 %605 }
 0x180   : > { %v607_v17 = vmul.f32 0.03125, %v606_v16 }
 0x182   : > { %v608_v18 = vadd.f32 1e-05, %v607_v17 }
 0x184   : > { %2232 = vrsqrt.f32 %v608_v18 }
 0x191   : > { %v2233_v19 = vpop.eup %2232 }
 0x192   : > { %v610_v21 = vmul.f32 %v2233_v19, %v602_v4 }
 0x194   : > { %v617_v23 = vmul.f32 %v1961_v20, %v610_v21 }
 0x196   : > { %v624_v24 = vadd.f32 %v1962_v22, %v617_v23 }
 0x198   : > { %2056 = vmatmul.mubr.msk.f32.vlgmr.msra.gmra.mxu1 %vm596_vm0, %v624_v24  ;;  %2078 = vmatmul.mubr.msk.f32.vlgmr.msra.gmra.mxu0 %vm596_vm0, %v624_v24 }
 0x199   : > { %2059 = vmatpush3.msra.mxu1 %v712_v25  ;;  %2066 = vmatprep.mubr.msk.f32.mxu1 %vm2412_vm1, %v2411_v9 }
 0x19a   : > { %2060 = vmatprep.subr.mxu1 %v2411_v9  ;;  %2092 = vmatprep.mubr.msk.f32.mxu0 %vm2412_vm1, %v2411_v9 }
 0x19b   : > { %2061 = vmatpush3.msra.mxu1 %v711_v26 }
 0x19c   : > { %2062 = vmatprep.subr.mxu1 %v2411_v9 }
 0x19d   : > { %2063 = vmatpush3.msra.mxu1 %v710_v27 }
 0x19e   : > { %2064 = vmatprep.subr.mxu1 %v2411_v9 }
 0x19f   : > { %2065 = vmatpush3.msra.mxu1 %v709_v28 }
 0x1a0   : > { %2067 = vmatmul.mubr.msk.f32.vlgmr.msra.gmra.mxu1 %vm596_vm0, %v624_v24  ;;  %2080 = vmatprep.subr.mxu1 %v2411_v9 }
 0x1a1   : > { %2082 = vmatprep.mubr.msk.f32.mxu1 %vm2412_vm1, %v2411_v9 }
 0x258   : > { %v705_v33 = vpop.f32.mrf.mxu1  ;;  %v867_v36 = vpop.f32.mrf.mxu0 }
 0x259   : > { %v706_v37 = vadd.f32 %v1963_v31, %v705_v33  ;;  %v868_v39 = vadd.f32 %v1967_v32, %v867_v36 }
 0x25a   : > { %v2057_v40 = vpop.f32.mrf.mxu1  ;;  %v2079_v41 = vpop.f32.mrf.mxu0 }
 0x25b   : > { %v1212_v42 = vmul.f32 %v1977_v34, %v706_v37  ;;  %v1378_v43 = vmul.f32 %v1981_v35, %v706_v37  ;;  %v1060_v44 = vmul.f32 %v1972_v38, %v868_v39  ;;  %v2720_v45 = vmul.f32 %v1977_v34, %v868_v39 }
 0x25c   : > { %v2722_v46 = vmul.f32 %v1981_v35, %v868_v39  ;;  %v878_v52 = vmul.f32 %v1969_v49, %v706_v37  ;;  %v974_v53 = vmul.f32 %v1972_v38, %v706_v37  ;;  %v968_v54 = vmul.f32 %v1969_v49, %v868_v39 }
 0x25d   : > { %2091 = vmatpush3.msra.mxu0 %v1060_v44 }
 0x25e   : > { %2100 = vmatprep.subr.mxu0 %v2411_v9 }
 0x260   : > { %v786_v48 = vpop.f32.mrf.mxu1 }
 0x261   : > { %v787_v50 = vadd.f32 %v1965_v47, %v786_v48  ;;  %v1541_v47 = vld [vmem:[#allocation5 + $0x10] sm:$0xff]  ;;  %v1539_v48 = vld [vmem:[#allocation5] sm:$0xff] }
 0x262   : > { %v2068_v51 = vpop.f32.mrf.mxu1 }
 0x263   : > { %2081 = vmatpush3.xpose.msk.msra.mxu1 %vm596_vm0, %v787_v50 }
 0x264   : > { %2085 = vmatprep.subr.mxu1 %v2411_v9 }
 0x266   : > { %2083 = vmatmul.mubr.msk.f32.vlgmr.msra.gmra.mxu1 %vm596_vm0, %v878_v52 }
 0x267   : > { %2086 = vmatpush3.xpose.msk.msra.mxu1 %vm596_vm0, %v787_v50  ;;  %2087 = vmatprep.mubr.msk.f32.mxu1 %vm2412_vm1, %v2411_v9 }
 0x268   : > { %2095 = vmatprep.subr.mxu1 %v2411_v9 }
 0x26a   : > { %2088 = vmatmul.mubr.msk.f32.vlgmr.msra.gmra.mxu1 %vm596_vm0, %v974_v53 }
 0x26b   : > { %2096 = vmatpush3.msra.mxu1 %v968_v54  ;;  %2097 = vmatprep.mubr.msk.f32.mxu1 %vm2412_vm1, %v2411_v9 }
 0x26c   : > { %2105 = vmatprep.subr.mxu1 %v2411_v9 }
 0x326   : > { %v951_v55 = vpop.f32.mrf.mxu1 }
 0x327   : > { %v955_v56 = vmul.f32 0.17677669, %v951_v55 }
 0x328   : > { %v2084_v57 = vpop.f32.mrf.mxu1 }
 0x329   : > { %v957_v58 = vsel %vm956_vm12, %v955_v56, -inf }
 0x32a   : > { %958 = vmax.xlane.f32.xlu0 %v957_v58  ;;  %v1044_v59 = vpop.f32.mrf.mxu1 }
 0x32b   : > { %v1048_v60 = vmul.f32 0.17677669, %v1044_v59 }
 0x32c   : > { %v2089_v61 = vpop.f32.mrf.mxu1 }
 0x32d   : > { %v1049_v62 = vsel %vm956_vm12, %v1048_v60, -inf }
 0x32e   : > { %1050 = vmax.xlane.f32.xlu1 %v1049_v62 }
 0x3b3   : > { %v959_v8 = vpop.xlane.xlu0 %958 }
 0x3b4   : > { %v960_v10 = vsub.f32 %v955_v56, %v959_v8  ;;  %v1985_v56 = vld [vmem:[%s2890_s10] ss:$0 sm:$0xff] }
 0x3b6   : > { %v961_v11 = vmul.f32 1.442695, %v960_v10 }
 0x3b7   : > { %v1051_v63 = vpop.xlane.xlu1 %1050 }
 0x3b8   : > { %v1052_v1 = vsub.f32 %v1048_v60, %v1051_v63 }
 0x3ba   : > { %v1053_v2 = vmul.f32 1.442695, %v1052_v1 }
 0x3bc   : > { %2234 = vpow2.f32 %v1053_v2 }
 0x3c9   : > { %v2235_v3 = vpop.eup %2234 }
 0x3ca   : > { %v1055_v4 = vsel %vm956_vm12, %v2235_v3, 0.0 }
 0x3cb   : > { %1056 = vadd.xlane.f32.xlu1 %v1055_v4  ;;  %v1656_v4 = vld [vmem:[#allocation7 + $0x18] sm:$0xff] }
 0x454   : > { %v1057_v5 = vpop.xlane.xlu1 %1056 }
 0x455   : > { %2236 = vrcp.f32 %v1057_v5  ;;  %v1655_v5 = vld [vmem:[#allocation7 + $0x10] sm:$0xff] }
 0x456   : > { %2238 = vpow2.f32 %v961_v11 }
 0x462   : > { %v2237_v6 = vpop.eup %2236 }
 0x463   : > { %v1059_v7 = vmul.f32 %v2237_v6, %v2235_v3  ;;  %v2239_v18 = vpop.eup %2238  ;;  %v1654_v6 = vld [vmem:[#allocation7 + $0x8] sm:$0xff] }
 0x464   : > { %v963_v22 = vsel %vm956_vm12, %v2239_v18, 0.0 }
 0x465   : > { %2093 = vmatmul.mubr.msk.f32.vlgmr.msra.gmra.mxu0 %vm956_vm12, %v1059_v7 }
 0x466   : > { %2101 = vmatpush3.xpose.msk.msra.mxu0 %vm596_vm0, %v787_v50  ;;  %2102 = vmatprep.mubr.msk.f32.mxu0 %vm2412_vm1, %v2411_v9 }
 0x467   : > { %2110 = vmatprep.subr.mxu0 %v2411_v9 }
 0x469   : > { %2103 = vmatmul.mubr.msk.f32.vlgmr.msra.gmra.mxu0 %vm596_vm0, %v1212_v42 }
 0x46a   : > { %2111 = vmatpush3.xpose.msk.msra.mxu0 %vm596_vm0, %v787_v50  ;;  %2112 = vmatprep.mubr.msk.f32.mxu0 %vm2412_vm1, %v2411_v9 }
 0x46b   : > { %2120 = vmatprep.subr.mxu0 %v2411_v9 }
 0x46d   : > { %2113 = vmatmul.mubr.msk.f32.vlgmr.msra.gmra.mxu0 %vm596_vm0, %v1378_v43 }
 0x46e   : > { %2128 = vmatprep.mubr.msk.f32.mxu0 %vm2412_vm1, %v2411_v9 }
 0x525   : > { %v2756_v12 = vpop.f32.mrf.mxu0 }
 0x527   : > { %v2094_v13 = vpop.f32.mrf.mxu0 }
 0x529   : > { %v1282_v14 = vpop.f32.mrf.mxu0 }
 0x52a   : > { %v1286_v15 = vmul.f32 0.17677669, %v1282_v14  ;;  %v1988_v14 = vld [vmem:[%s2892_s12] ss:$0 sm:$0xff] }
 0x52b   : > { %v2104_v16 = vpop.f32.mrf.mxu0 }
 0x52c   : > { %v1287_v17 = vsel %vm956_vm12, %v1286_v15, -inf }
 0x52d   : > { %1288 = vmax.xlane.f32.xlu1 %v1287_v17  ;;  %v1448_v19 = vpop.f32.mrf.mxu0  ;;  %v1753_v17 = vld [vmem:[%s2895_s15 + $0x38] sm:$0xff] }
 0x52e   : > { %v1452_v20 = vmul.f32 0.17677669, %v1448_v19  ;;  %v1751_v19 = vld [vmem:[%s2895_s15 + $0x28] sm:$0xff] }
 0x52f   : > { %v2114_v21 = vpop.f32.mrf.mxu0 }
 0x530   : > { %v1453_v23 = vsel %vm956_vm12, %v1452_v20, -inf  ;;  %v1749_v21 = vld [vmem:[%s2895_s15 + $0x18] sm:$0xff] }
 0x531   : > { %964 = vadd.xlane.f32.xlu1 %v963_v22  ;;  %1454 = vmax.xlane.f32.xlu0 %v1453_v23  ;;  %v1748_v22 = vld [vmem:[%s2895_s15 + $0x10] sm:$0xff]  ;;  %v1747_v23 = vld [vmem:[%s2895_s15 + $0x8] sm:$0xff] }
 0x5b6   : > { %v1289_v24 = vpop.xlane.xlu1 %1288 }
 0x5b7   : > { %v1290_v25 = vsub.f32 %v1286_v15, %v1289_v24  ;;  %v1746_v24 = vld [vmem:[%s2895_s15] sm:$0xff] }
 0x5b9   : > { %v1291_v26 = vmul.f32 1.442695, %v1290_v25  ;;  %v1989_v25 = vld [vmem:[%s2894_s14] ss:$0 sm:$0xff] }
 0x5ba   : > { %v965_v27 = vpop.xlane.xlu1 %964  ;;  %v1455_v28 = vpop.xlane.xlu0 %1454 }
 0x5bb   : > { %2240 = vpow2.f32 %v1291_v26  ;;  %v1456_v29 = vsub.f32 %v1452_v20, %v1455_v28  ;;  %v1750_v20 = vld [vmem:[%s2895_s15 + $0x20] sm:$0xff] }
 0x5bc   : > { %2242 = vrcp.f32 %v965_v27 }
 0x5bd   : > { %v1457_v30 = vmul.f32 1.442695, %v1456_v29 }
 0x5bf   : > { %2244 = vpow2.f32 %v1457_v30 }
 0x5c8   : > { %v2241_v31 = vpop.eup %2240 }
 0x5c9   : > { %v2243_v32 = vpop.eup %2242  ;;  %v1293_v33 = vsel %vm956_vm12, %v2241_v31, 0.0 }
 0x5ca   : > { %1294 = vadd.xlane.f32.xlu0 %v1293_v33  ;;  %v967_v34 = vmul.f32 %v2243_v32, %v2239_v18  ;;  %v1752_v18 = vld [vmem:[%s2895_s15 + $0x30] sm:$0xff] }
 0x5cc   : > { %v2245_v35 = vpop.eup %2244  ;;  %2098 = vmatmul.mubr.msk.f32.vlgmr.msra.gmra.mxu1 %vm956_vm12, %v967_v34 }
 0x5cd   : > { %2106 = vmatpush3.msra.mxu1 %v2720_v45  ;;  %v1459_v36 = vsel %vm956_vm12, %v2245_v35, 0.0  ;;  %2107 = vmatprep.mubr.msk.f32.mxu1 %vm2412_vm1, %v2411_v9  ;;  %v1542_v45 = vld [vmem:[#allocation5 + $0x18] sm:$0xff] }
 0x5ce   : > { %1460 = vadd.xlane.f32.xlu1 %v1459_v36  ;;  %2115 = vmatprep.subr.mxu1 %v2411_v9 }
 0x5cf   : > { %2121 = vmatpush3.msra.mxu0 %v1542_v45 }
 0x5d0   : > { %2122 = vmatprep.subr.mxu0 %v2411_v9 }
 0x5d1   : > { %2123 = vmatpush3.msra.mxu0 %v1541_v47 }
 0x5d2   : > { %2124 = vmatprep.subr.mxu0 %v2411_v9 }
 0x653   : > { %v1295_v37 = vpop.xlane.xlu0 %1294 }
 0x654   : > { %2246 = vrcp.f32 %v1295_v37  ;;  %v1991_v37 = vld [vmem:[%s2940_s30] ss:$0 sm:$0xff] }
 0x657   : > { %v1461_v38 = vpop.xlane.xlu1 %1460 }
 0x658   : > { %2248 = vrcp.f32 %v1461_v38 }
 0x661   : > { %v2247_v39 = vpop.eup %2246 }
 0x662   : > { %v1297_v40 = vmul.f32 %v2247_v39, %v2241_v31 }
 0x664   : > { %2108 = vmatmul.mubr.msk.f32.vlgmr.msra.gmra.mxu1 %vm956_vm12, %v1297_v40 }
 0x665   : > { %v2249_v41 = vpop.eup %2248  ;;  %2116 = vmatpush3.msra.mxu1 %v2722_v46  ;;  %2117 = vmatprep.mubr.msk.f32.mxu1 %vm2412_vm1, %v2411_v9  ;;  %v1540_v46 = vld [vmem:[#allocation5 + $0x8] sm:$0xff] }
 0x666   : > { %v1463_v42 = vmul.f32 %v2249_v41, %v2245_v35  ;;  %2131 = vmatprep.subr.mxu1 %v2411_v9  ;;  %2125 = vmatpush3.msra.mxu0 %v1540_v46 }
 0x667   : > { %2126 = vmatprep.subr.mxu0 %v2411_v9 }
 0x668   : > { %2118 = vmatmul.mubr.msk.f32.vlgmr.msra.gmra.mxu1 %vm956_vm12, %v1463_v42  ;;  %2127 = vmatpush3.msra.mxu0 %v1539_v48 }
 0x669   : > { %2139 = vmatprep.mubr.msk.f32.mxu1 %vm2412_vm1, %v2411_v9  ;;  %2142 = vmatprep.subr.mxu0 %v2411_v9 }
 0x66a   : > { %2132 = vmatpush3.msra.mxu1 %v1656_v4 }
 0x66b   : > { %2133 = vmatprep.subr.mxu1 %v2411_v9 }
 0x66c   : > { %2134 = vmatpush3.msra.mxu1 %v1655_v5 }
 0x66d   : > { %2135 = vmatprep.subr.mxu1 %v2411_v9 }
 0x66e   : > { %2136 = vmatpush3.msra.mxu1 %v1654_v6 }
 0x66f   : > { %2137 = vmatprep.subr.mxu1 %v2411_v9 }
 0x68c   : > { %v1203_v43 = vpop.f32.mrf.mxu1 }
 0x68d   : > { %v1204_v50 = vadd.f32 %v1203_v43, %v2756_v12  ;;  %v1987_v12 = vld [vmem:[%s2891_s11] ss:$0 sm:$0xff] }
 0x68e   : > { %v2099_v44 = vpop.f32.mrf.mxu1 }
 0x724   : > { %v1368_v49 = vpop.f32.mrf.mxu1 }
 0x725   : > { %v1372_v52 = vadd.f32 %v1368_v49, %v1204_v50 }
 0x726   : > { %v2109_v51 = vpop.f32.mrf.mxu1 }
 0x728   : > { %v1534_v53 = vpop.f32.mrf.mxu1 }
 0x729   : > { %v1538_v54 = vadd.f32 %v1534_v53, %v1372_v52 }
 0x72a   : > { %v2119_v55 = vpop.f32.mrf.mxu1 }
 0x72b   : > { %2129 = vmatmul.mubr.msk.f32.vlgmr.msra.gmra.mxu0 %vm596_vm0, %v1538_v54 }
 0x72c   : > { %2158 = vmatprep.mubr.msk.f32.mxu0 %vm2412_vm1, %v2411_v9  ;;  %2143 = vmatpush3.msra.mxu0 %v1753_v17 }
 0x72d   : > { %2144 = vmatprep.subr.mxu0 %v2411_v9 }
 0x72e   : > { %2145 = vmatpush3.msra.mxu0 %v1752_v18 }
 0x72f   : > { %2146 = vmatprep.subr.mxu0 %v2411_v9 }
 0x730   : > { %2147 = vmatpush3.msra.mxu0 %v1751_v19 }
 0x731   : > { %2148 = vmatprep.subr.mxu0 %v2411_v9 }
 0x732   : > { %2149 = vmatpush3.msra.mxu0 %v1750_v20 }
 0x733   : > { %2150 = vmatprep.subr.mxu0 %v2411_v9 }
 0x734   : > { %2151 = vmatpush3.msra.mxu0 %v1749_v21 }
 0x735   : > { %2152 = vmatprep.subr.mxu0 %v2411_v9 }
 0x736   : > { %2153 = vmatpush3.msra.mxu0 %v1748_v22 }
 0x737   : > { %2154 = vmatprep.subr.mxu0 %v2411_v9 }
 0x738   : > { %2155 = vmatpush3.msra.mxu0 %v1747_v23 }
 0x739   : > { %2156 = vmatprep.subr.mxu0 %v2411_v9 }
 0x73a   : > { %2157 = vmatpush3.msra.mxu0 %v1746_v24 }
 0x7eb   : > { %v1619_v57 = vpop.f32.mrf.mxu0 }
 0x7ec   : > { %v1620_v58 = vadd.f32 %v1985_v56, %v1619_v57 }
 0x7ed   : > { %v2130_v59 = vpop.f32.mrf.mxu0 }
 0x7ee   : > { %v2788_v60 = vadd.f32 %v1620_v58, %v2636_v0  ;;  %v1653_v0 = vld [vmem:[#allocation7] sm:$0xff] }
 0x7ef   : > { %2138 = vmatpush3.msra.mxu1 %v1653_v0 }
 0x7f0   : > { %v1626_v61 = vsel %vm596_vm0, %v2788_v60, 0.0 }
 0x7f1   : > { %1627 = vadd.xlane.f32.xlu0 %v1626_v61 }
 0x87a   : > { %v1628_v62 = vpop.xlane.xlu0 %1627 }
 0x87b   : > { %v1629_v63 = vmul.f32 0.03125, %v1628_v62 }
 0x87d   : > { %v1630_v1 = vsub.f32 %v2788_v60, %v1629_v63 }
 0x87f   : > { %v1631_v2 = vmul.f32 %v1630_v1, %v1630_v1 }
 0x881   : > { %v1632_v3 = vsel %vm596_vm0, %v1631_v2, 0.0 }
 0x882   : > { %1633 = vadd.xlane.f32.xlu1 %v1632_v3 }
 0x90b   : > { %v1634_v7 = vpop.xlane.xlu1 %1633 }
 0x90c   : > { %v1635_v8 = vmul.f32 0.03125, %v1634_v7 }
 0x90e   : > { %v1636_v10 = vadd.f32 1e-05, %v1635_v8 }
 0x910   : > { %2250 = vrsqrt.f32 %v1636_v10 }
 0x91d   : > { %v2251_v11 = vpop.eup %2250 }
 0x91e   : > { %v1638_v13 = vmul.f32 %v2251_v11, %v1630_v1 }
 0x920   : > { %v1645_v15 = vmul.f32 %v1987_v12, %v1638_v13 }
 0x922   : > { %v1652_v16 = vadd.f32 %v1988_v14, %v1645_v15 }
 0x924   : > { %2140 = vmatmul.mubr.msk.f32.vlgmr.msra.gmra.mxu1 %vm596_vm0, %v1652_v16 }
 0x9e4   : > { %v1733_v26 = vpop.f32.mrf.mxu1 }
 0x9e5   : > { %v1734_v27 = vadd.f32 %v1989_v25, %v1733_v26 }
 0x9e6   : > { %v2141_v28 = vpop.f32.mrf.mxu1 }
 0x9e7   : > { %v1738_v29 = vmul.f32 0.044715, %v1734_v27  ;;  %v1737_v35 = vmul.f32 0.5, %v1734_v27 }
 0x9e9   : > { %v1739_v30 = vmul.f32 %v1738_v29, %v1734_v27 }
 0x9eb   : > { %v1740_v31 = vmul.f32 %v1739_v30, %v1734_v27 }
 0x9ed   : > { %v1741_v32 = vadd.f32 %v1740_v31, %v1734_v27 }
 0x9ef   : > { %v1742_v33 = vmul.f32 0.7978846, %v1741_v32 }
 0x9f1   : > { %2252 = vtanh.f32 %v1742_v33 }
 0x9fe   : > { %v2253_v34 = vpop.eup %2252 }
 0x9ff   : > { %v1744_v36 = vadd.f32 1.0, %v2253_v34 }
 0xa01   : > { %v1745_v9 = vmul.f32 %v1744_v36, %v1737_v35 }
 0xa03   : > { %2159 = vmatmul.mubr.msk.f32.vlgmr.msra.gmra.mxu0 %vm1761_vm13, %v1745_v9 }
 0xac3   : > { %v1831_v38 = vpop.f32.mrf.mxu0 }
 0xac4   : > { %v1832_v39 = vadd.f32 %v1991_v37, %v1831_v38 }
 0xac5   : > { %v2160_v40 = vpop.f32.mrf.mxu0 }
 0xac6   : > { %v1836_v41 = vmul.f32 0.044715, %v1832_v39  ;;  %v1835_v46 = vmul.f32 0.5, %v1832_v39 }
 0xac8   : > { %v1837_v42 = vmul.f32 %v1836_v41, %v1832_v39 }
 0xaca   : > { %v1838_v43 = vmul.f32 %v1837_v42, %v1832_v39 }
 0xacc   : > { %v1839_v44 = vadd.f32 %v1838_v43, %v1832_v39 }
 0xace   : > { %v1840_v45 = vmul.f32 0.7978846, %v1839_v44 }
 0xad0   : > { %2254 = vtanh.f32 %v1840_v45 }
 0xadd   : > { %v2255_v47 = vpop.eup %2254 }
 0xade   : > { %v1842_v48 = vadd.f32 1.0, %v2255_v47 }
 0xae0   : > { %v1843_v49 = vmul.f32 %v1842_v48, %v1835_v46 }
 0xae2   : > { %v1844_v50 = vadd.f32 %v1843_v49, %v2788_v60 }
 0xae4   : > { %1845 = vst.msk [vmem:[%s592_s19] sm:$0xff] %vm596_vm0, %v1844_v50 }
 0xae5   : > { %2349 = shalt.err (!%p2346_p9)
}
 0xae6   : > { %s2350_s17 = scalar_lea.hbm %s1858_s13, 128  ;;  %s2354_s29 = scalar_lea.hbm %s2943_s16, 256 }
 0xae7   : > { %p2351_p13 = scmp.ne.s32.totalorder %s1858_s13, %s2350_s17  ;;  %p2355_p4 = scmp.lt.s32.totalorder %s1858_s13, %s2943_s16 }
 0xae8   : > { %p2356_p8 = scmp.lt.s32.totalorder %s2354_s29, %s2350_s17 }
 0xae9   : > { %p2352_p5 = pnand %p2351_p13, %p2944_p0 }
 0xaea   : > { %p2357_p3 = por %p2356_p8, %p2355_p4 }
 0xaeb   : > { %p2353_p10 = pneg %p2352_p5 }
 0xaed   : > { %p2358_p11 = pnand %p2357_p3, %p2353_p10 }
 0xaef   : > { %2361 = shalt.err (!%p2358_p11)
}
 0xaf0   : > { %2171 = dma.vmem_to_hbm [thread:$0]  (%p2944_p0), %s1861_s23, 128, %s1858_s13, %s1847_s0  }
 0xaf1 PF: > { %s2945_s21 = sld [smem:[#allocation12_spill]] }
 0xaf2   : > { %s2946_s27 = sld [smem:[#allocation15_spill]] }
 0xaf3   : > { %s2947_s18 = sld [smem:[#allocation14_spill]] }
 0xaf7   : > { %s1872_s28 = sand.u32 1, %s2945_s21  }
 0xaf8   : > { %p2948_p1 = scmp.ne.s32.totalorder %s2946_s27, 0  ;;  %s1873_s24 = scalar_lea.sflag [#allocation4], %s1872_s28 }
 0xaf9   : > { %p2949_p2 = scmp.ge.s32.totalorder %s2947_s18, 2 }
 0xafb   : > { %p2185_p6 = pnand %p2949_p2, %p2948_p1 }
 0xafd   : > { %p2186_p12 = pneg %p2185_p6 }
 0xaff   : > { %2387 = dma.done.wait (%p2186_p12), %s1873_s24, 128  }
 0xb00   : > { %2389 = vsyncadd (%p2186_p12), %s1873_s24, 4294967168  ;;  %s2950_s27 = sld [smem:[#allocation16_spill]]  ;;  %s2953_s24 = smov %s2396_s25 }
 0xb01   : > { %s2951_s20 = sld [smem:[#allocation13_spill]] }
 0xb02   : > { %s2952_s26 = sld [smem:[#allocation18_spill]] }
 0xb06   : > { %p31_p7 = scmp.ge.s32.totalorder %s2950_s27, 4  }
 0xb07   : > { %s2954_s25 = smov %s2951_s20 }
 0xb08   :  { %33 = sbr.rel (!%p31_p7) target bundleno = 13 (0xd), region = 141 }
 0xb0d   :  { %1878 = vsyncpa [#allocation3], 1 }
 0xb0e   :  { %1880 = vsyncpa [#allocation3 + $0x1], 1 }
 0xb0f   :  { %1881 = vsyncpa [#allocation6], 1 }
 0xb10   :  { %1882 = vsyncpa [#allocation4], 1 }
 0xb11   :  { %1884 = vsyncpa [#allocation4 + $0x1], 1 }

</bundles_post_ra>
